<compile_context>
chip_gen: v5e
topology: v5e:2x2
jax: 0.10.0
libtpu: 0.0.40
codegen_flags: <defaults>
</compile_context>

<pallas_src>
import jax
import jax.numpy as jnp
from jax.experimental import pallas as pl
from jax.experimental.pallas import tpu as pltpu


def _make_kernel(NB, Ci, Kh, Kw, Ws, OH, OW, LOUT, activation, norm):
    """Stride-1 conv kernel on a flattened, pre-padded image block."""
    inv_count = 1.0 / float(OH * OW)

    def kernel(x_ref, w_ref, b_ref, m_ref, o_ref, p_ref):
        # x_ref: (NB, Ci, Lp)  flattened zero-padded images (row-major H*W + tail pad)
        # w_ref: (Cout, Kh*Kw*Ci)  rows ordered tap-major (kh, kw), channel-minor
        # b_ref: (Cout, 1) bias
        # m_ref: (1, LOUT) valid-column mask (only read when norm == 'in')
        # o_ref: (NB, Cout, LOUT)
        # p_ref: (Kh*Kw*Ci, LOUT) VMEM scratch holding the im2col matrix
        wf = w_ref[...]                          # loaded once, reused for all NB images
        bias = b_ref[...].astype(jnp.float32)    # (Cout, 1)

        for n in range(NB):                      # static unroll over images in block
            # Fused im2col: each tap (kh, kw) of the stride-1 conv is a contiguous
            # slice of the flattened padded image shifted by kh*Ws + kw.
            t = 0
            for kh in range(Kh):
                for kw in range(Kw):
                    d = kh * Ws + kw             # static flat shift of this tap
                    p_ref[pl.ds(t * Ci, Ci), :] = x_ref[n, :, pl.ds(d, LOUT)]
                    t += 1

            # Single MXU contraction, K = Kh*Kw*Ci; f32 accumulation, no up-cast
            # of the operands.
            acc = jnp.dot(wf, p_ref[...], preferred_element_type=jnp.float32)
            acc = acc + bias                     # (Cout, LOUT), lane-dense

            if norm == 'in':
                # InstanceNorm2d(affine=False, eps=1e-5): per-image/per-channel
                # stats over the OH*OW *valid* columns only (the mask removes the
                # Ws-OW garbage columns produced by the flat-shift im2col).
                m = m_ref[...]
                mean = jnp.sum(acc * m, axis=1, keepdims=True) * inv_count
                cen = acc - mean
                var = jnp.sum(cen * cen * m, axis=1, keepdims=True) * inv_count
                acc = cen * jax.lax.rsqrt(var + 1e-5)

            if activation == 'relu':
                acc = jnp.maximum(acc, 0.0)
            elif activation == 'lrelu':
                acc = jnp.where(acc >= 0.0, acc, 0.2 * acc)
            elif activation == 'tanh':
                acc = jnp.tanh(acc)
            elif activation == 'sig':
                acc = jax.nn.sigmoid(acc)
            # 'none' -> identity

            o_ref[n] = acc.astype(o_ref.dtype)

    return kernel


def _space_to_depth(x_pad, w, stride):
    """Reduce a stride-s conv on padded input to an equivalent stride-1 conv."""
    if stride == 1:
        return x_pad, w
    N, Cin, Hp, Wp = x_pad.shape
    Cout, _, KH, KW = w.shape
    s = stride
    OH = (Hp - KH) // s + 1
    OW = (Wp - KW) // s + 1
    Kh = -(-KH // s)                 # ceil(KH / s)
    Kw = -(-KW // s)
    Hs, Ws = OH + Kh - 1, OW + Kw - 1
    Ht, Wt = Hs * s, Ws * s
    xe = jnp.pad(x_pad, ((0, 0), (0, 0),
                         (0, max(0, Ht - Hp)), (0, max(0, Wt - Wp))))
    xe = xe[:, :, :Ht, :Wt]
    xe = xe.reshape(N, Cin, Hs, s, Ws, s)
    x_s2d = jnp.transpose(xe, (0, 1, 3, 5, 2, 4)).reshape(N, Cin * s * s, Hs, Ws)
    we = jnp.pad(w, ((0, 0), (0, 0), (0, Kh * s - KH), (0, Kw * s - KW)))
    we = we.reshape(Cout, Cin, Kh, s, Kw, s)
    w_s2d = jnp.transpose(we, (0, 1, 3, 5, 2, 4)).reshape(Cout, Cin * s * s, Kh, Kw)
    return x_s2d, w_s2d


def _pick_batch_block(n, cap=8):
    nb = 1
    for d in range(1, min(n, cap) + 1):
        if n % d == 0:
            nb = d
    return nb


def block_conv2d(x_nchw, w_oihw, b, *, stride, padding=0,
                 activation='relu', norm='none', batch_block=None):
    if norm == 'bn':
        # TODO(synk): BatchNorm2d needs cross-batch (or running) statistics,
        # which this per-block kernel does not compute.
        raise NotImplementedError("norm='bn' is not supported by the Pallas kernel")

    N, Cin, H, W = x_nchw.shape
    Cout, Cin2, KH, KW = w_oihw.shape
    assert Cin == Cin2
    Hp, Wp = H + 2 * padding, W + 2 * padding
    OH = (Hp - KH) // stride + 1
    OW = (Wp - KW) // stride + 1
    assert OH > 0 and OW > 0

    # glue: zero-pad (NCHW stays channel-major, no transpose) and reduce
    # stride>1 to stride-1 via space-to-depth.
    x_pad = jnp.pad(x_nchw, ((0, 0), (0, 0),
                             (padding, padding), (padding, padding)))
    x_s2d, w_s2d = _space_to_depth(x_pad, w_oihw, stride)
    _, Ci, Hs, Ws = x_s2d.shape
    _, _, Kh, Kw = w_s2d.shape
    K = Kh * Kw * Ci
    LOUT = OH * Ws                     # lane-dense accumulator width (valid cols = OW)
    Lp = Hs * Ws + (Kw - 1)            # flat length so every tap slice stays in bounds

    x_flat = x_s2d.reshape(N, Ci, Hs * Ws)
    x_flat = jnp.pad(x_flat, ((0, 0), (0, 0), (0, Lp - Hs * Ws)))
    # weights as (Cout, K) with rows ordered (kh, kw, ci) to match the im2col
    wf = jnp.transpose(w_s2d, (0, 2, 3, 1)).reshape(Cout, K)
    b2 = b.reshape(Cout, 1).astype(jnp.float32)
    # valid-column mask (only used for InstanceNorm statistics)
    mask = jnp.tile((jnp.arange(Ws) < OW).astype(jnp.float32), OH).reshape(1, LOUT)

    NB = batch_block or _pick_batch_block(N)
    assert N % NB == 0
    kernel = _make_kernel(NB, Ci, Kh, Kw, Ws, OH, OW, LOUT, activation, norm)

    itemsize = jnp.dtype(x_flat.dtype).itemsize
    in_block = NB * Ci * Lp * itemsize
    out_block = NB * Cout * LOUT * itemsize
    scratch_bytes = K * LOUT * itemsize + (Cout + 1) * LOUT * 4 + Cout * K * itemsize
    vmem_limit = int(min(100 * 1024 * 1024,
                         max(16 * 1024 * 1024,
                             2 * (in_block + out_block) + scratch_bytes + (1 << 20))))

    flops = 2 * N * OH * OW * KH * KW * Cin * Cout
    transc = N * OH * OW * Cout if activation in ('tanh', 'sig') else 0
    bytes_accessed = (x_flat.size * itemsize + wf.size * itemsize
                      + N * Cout * LOUT * itemsize)

    out_flat = pl.pallas_call(
        kernel,
        out_shape=jax.ShapeDtypeStruct((N, Cout, LOUT), x_nchw.dtype),
        grid_spec=pltpu.PrefetchScalarGridSpec(
            num_scalar_prefetch=0,
            grid=(N // NB,),
            in_specs=[
                pl.BlockSpec((NB, Ci, Lp), lambda g: (g, 0, 0)),
                # weights / bias / mask are grid-invariant (constant index_map);
                # they are tiny so default double-buffering costs ~nothing.
                pl.BlockSpec((Cout, K), lambda g: (0, 0)),
                pl.BlockSpec((Cout, 1), lambda g: (0, 0)),
                pl.BlockSpec((1, LOUT), lambda g: (0, 0)),
            ],
            out_specs=pl.BlockSpec((NB, Cout, LOUT), lambda g: (g, 0, 0)),
            scratch_shapes=[pltpu.VMEM((K, LOUT), x_flat.dtype)],
        ),
        compiler_params=pltpu.CompilerParams(
            dimension_semantics=("parallel",),
            vmem_limit_bytes=vmem_limit),
        cost_estimate=pl.CostEstimate(flops=flops, transcendentals=transc,
                                      bytes_accessed=bytes_accessed),
    )(x_flat, wf, b2, mask)

    # TODO(synk): for large images on v7x (64 MiB VMEM) add spatial row-tiling
    # with a (Kh-1)-row halo instead of one whole image per grid block.
    out = out_flat.reshape(N, Cout, OH, Ws)[:, :, :, :OW]
    return out


if __name__ == "__main__":
    # Config mirroring BlockConv2d(input_dim=4, output_dim=8, kernel_size=3,
    #                              stride=1, padding=1, activation='relu', norm='none')
    N, Cin, H, W = 2, 4, 16, 16
    Cout, Ksz = 8, 3

    key = jax.random.PRNGKey(0)
    kx, kwt, kb = jax.random.split(key, 3)
    x = jax.random.normal(kx, (N, Cin, H, W), dtype=jnp.float32)
    fan_in = Cin * Ksz * Ksz
    bound = 1.0 / (fan_in ** 0.5)
    w = jax.random.uniform(kwt, (Cout, Cin, Ksz, Ksz), jnp.float32, -bound, bound)
    b = jax.random.uniform(kb, (Cout,), jnp.float32, -bound, bound)

    def torch_ref(xx, ww, bb, stride, padding, activation, norm):
        y = jax.lax.conv_general_dilated(
            xx, ww, window_strides=(stride, stride),
            padding=((padding, padding), (padding, padding)),
            dimension_numbers=('NCHW', 'OIHW', 'NCHW'))
        y = y + bb.reshape(1, -1, 1, 1)
        if norm == 'in':
            mu = jnp.mean(y, axis=(2, 3), keepdims=True)
            var = jnp.var(y, axis=(2, 3), keepdims=True)
            y = (y - mu) / jnp.sqrt(var + 1e-5)
        if activation == 'relu':
            y = jnp.maximum(y, 0.0)
        elif activation == 'lrelu':
            y = jnp.where(y >= 0.0, y, 0.2 * y)
        return y

    # 1) the reference config: stride=1, padding=1, relu, no norm
    f1 = jax.jit(lambda a, ww, bb: block_conv2d(a, ww, bb, stride=1, padding=1,
                                                activation='relu', norm='none'))
    out1 = jax.block_until_ready(f1(x, w, b))
    ref1 = torch_ref(x, w, b, 1, 1, 'relu', 'none')
    assert out1.shape == (N, Cout, H, W), out1.shape
    assert jnp.allclose(out1, ref1, atol=1e-4, rtol=1e-4), \
        float(jnp.max(jnp.abs(out1 - ref1)))

    # 2) stride=2, padding=1, lrelu, InstanceNorm — exercises the space-to-depth
    #    path and the masked 'in' statistics.
    f2 = jax.jit(lambda a, ww, bb: block_conv2d(a, ww, bb, stride=2, padding=1,
                                                activation='lrelu', norm='in'))
    out2 = jax.block_until_ready(f2(x, w, b))
    ref2 = torch_ref(x, w, b, 2, 1, 'lrelu', 'in')
    assert out2.shape == ref2.shape, (out2.shape, ref2.shape)
    assert jnp.allclose(out2, ref2, atol=1e-3, rtol=1e-3), \
        float(jnp.max(jnp.abs(out2 - ref2)))

    print("KERNEL_OK")
</pallas_src>

<mosaic_0001>
module attributes {stable_mosaic.version = 11 : i64} {
  func.func @kernel(%arg0: i32, %arg1: memref<2x4x326xf32, #tpu.memory_space<vmem>>, %arg2: memref<8x36xf32, #tpu.memory_space<vmem>>, %arg3: memref<8x1xf32, #tpu.memory_space<vmem>>, %arg4: memref<1x288xf32, #tpu.memory_space<vmem>>, %arg5: memref<2x8x288xf32, #tpu.memory_space<vmem>>, %arg6: memref<36x288xf32, #tpu.memory_space<vmem>>) attributes {dimension_semantics = [#tpu.dimension_semantics<parallel>], iteration_bounds = array<i64: 1>, scalar_prefetch = 0 : i64, scratch_operands = 1 : i64, tpu.core_type = #tpu.core_type<tc>, window_params = [{transform_indices = @transform_0, window_bounds = array<i64: 2, 4, 326>}, {pipeline_mode = #tpu.pipeline_mode<synchronous>, transform_indices = @transform_1, window_bounds = array<i64: 8, 36>}, {pipeline_mode = #tpu.pipeline_mode<synchronous>, transform_indices = @transform_2, window_bounds = array<i64: 8, 1>}, {pipeline_mode = #tpu.pipeline_mode<synchronous>, transform_indices = @transform_3, window_bounds = array<i64: 1, 288>}, {transform_indices = @transform_4, window_bounds = array<i64: 2, 8, 288>}]} {
    %c0 = arith.constant 0 : index
    %c0_0 = arith.constant 0 : index
    %0 = vector.load %arg2[%c0, %c0_0] : memref<8x36xf32, #tpu.memory_space<vmem>>, vector<8x36xf32>
    %c0_1 = arith.constant 0 : index
    %c0_2 = arith.constant 0 : index
    %1 = vector.load %arg3[%c0_1, %c0_2] : memref<8x1xf32, #tpu.memory_space<vmem>>, vector<8x1xf32>
    %c0_3 = arith.constant 0 : index
    %c0_4 = arith.constant 0 : index
    %c0_5 = arith.constant 0 : index
    %2 = vector.load %arg1[%c0_3, %c0_4, %c0_5] : memref<2x4x326xf32, #tpu.memory_space<vmem>>, vector<1x4x288xf32>
    %3 = vector.shape_cast %2 : vector<1x4x288xf32> to vector<4x288xf32>
    %c0_6 = arith.constant 0 : index
    %c0_7 = arith.constant 0 : index
    %4 = vector.load %arg6[%c0_6, %c0_7] : memref<36x288xf32, #tpu.memory_space<vmem>>, vector<4x288xf32>
    tpu.vector_store %arg6[%c0_6, %c0_7], %3 {strides = array<i32>} : memref<36x288xf32, #tpu.memory_space<vmem>>, vector<4x288xf32>,
    %c0_8 = arith.constant 0 : index
    %c0_9 = arith.constant 0 : index
    %c1 = arith.constant 1 : index
    %5 = vector.load %arg1[%c0_8, %c0_9, %c1] : memref<2x4x326xf32, #tpu.memory_space<vmem>>, vector<1x4x288xf32>
    %6 = vector.shape_cast %5 : vector<1x4x288xf32> to vector<4x288xf32>
    %c4 = arith.constant 4 : index
    %c0_10 = arith.constant 0 : index
    %7 = vector.load %arg6[%c4, %c0_10] : memref<36x288xf32, #tpu.memory_space<vmem>>, vector<4x288xf32>
    tpu.vector_store %arg6[%c4, %c0_10], %6 {strides = array<i32>} : memref<36x288xf32, #tpu.memory_space<vmem>>, vector<4x288xf32>,
    %c0_11 = arith.constant 0 : index
    %c0_12 = arith.constant 0 : index
    %c2 = arith.constant 2 : index
    %8 = vector.load %arg1[%c0_11, %c0_12, %c2] : memref<2x4x326xf32, #tpu.memory_space<vmem>>, vector<1x4x288xf32>
    %9 = vector.shape_cast %8 : vector<1x4x288xf32> to vector<4x288xf32>
    %c8 = arith.constant 8 : index
    %c0_13 = arith.constant 0 : index
    %10 = vector.load %arg6[%c8, %c0_13] : memref<36x288xf32, #tpu.memory_space<vmem>>, vector<4x288xf32>
    tpu.vector_store %arg6[%c8, %c0_13], %9 {strides = array<i32>} : memref<36x288xf32, #tpu.memory_space<vmem>>, vector<4x288xf32>,
    %c0_14 = arith.constant 0 : index
    %c0_15 = arith.constant 0 : index
    %c18 = arith.constant 18 : index
    %11 = vector.load %arg1[%c0_14, %c0_15, %c18] : memref<2x4x326xf32, #tpu.memory_space<vmem>>, vector<1x4x288xf32>
    %12 = vector.shape_cast %11 : vector<1x4x288xf32> to vector<4x288xf32>
    %c12 = arith.constant 12 : index
    %c0_16 = arith.constant 0 : index
    %13 = vector.load %arg6[%c12, %c0_16] : memref<36x288xf32, #tpu.memory_space<vmem>>, vector<4x288xf32>
    tpu.vector_store %arg6[%c12, %c0_16], %12 {strides = array<i32>} : memref<36x288xf32, #tpu.memory_space<vmem>>, vector<4x288xf32>,
    %c0_17 = arith.constant 0 : index
    %c0_18 = arith.constant 0 : index
    %c19 = arith.constant 19 : index
    %14 = vector.load %arg1[%c0_17, %c0_18, %c19] : memref<2x4x326xf32, #tpu.memory_space<vmem>>, vector<1x4x288xf32>
    %15 = vector.shape_cast %14 : vector<1x4x288xf32> to vector<4x288xf32>
    %c16 = arith.constant 16 : index
    %c0_19 = arith.constant 0 : index
    %16 = vector.load %arg6[%c16, %c0_19] : memref<36x288xf32, #tpu.memory_space<vmem>>, vector<4x288xf32>
    tpu.vector_store %arg6[%c16, %c0_19], %15 {strides = array<i32>} : memref<36x288xf32, #tpu.memory_space<vmem>>, vector<4x288xf32>,
    %c0_20 = arith.constant 0 : index
    %c0_21 = arith.constant 0 : index
    %c20 = arith.constant 20 : index
    %17 = vector.load %arg1[%c0_20, %c0_21, %c20] : memref<2x4x326xf32, #tpu.memory_space<vmem>>, vector<1x4x288xf32>
    %18 = vector.shape_cast %17 : vector<1x4x288xf32> to vector<4x288xf32>
    %c20_22 = arith.constant 20 : index
    %c0_23 = arith.constant 0 : index
    %19 = vector.load %arg6[%c20_22, %c0_23] : memref<36x288xf32, #tpu.memory_space<vmem>>, vector<4x288xf32>
    tpu.vector_store %arg6[%c20_22, %c0_23], %18 {strides = array<i32>} : memref<36x288xf32, #tpu.memory_space<vmem>>, vector<4x288xf32>,
    %c0_24 = arith.constant 0 : index
    %c0_25 = arith.constant 0 : index
    %c36 = arith.constant 36 : index
    %20 = vector.load %arg1[%c0_24, %c0_25, %c36] : memref<2x4x326xf32, #tpu.memory_space<vmem>>, vector<1x4x288xf32>
    %21 = vector.shape_cast %20 : vector<1x4x288xf32> to vector<4x288xf32>
    %c24 = arith.constant 24 : index
    %c0_26 = arith.constant 0 : index
    %22 = vector.load %arg6[%c24, %c0_26] : memref<36x288xf32, #tpu.memory_space<vmem>>, vector<4x288xf32>
    tpu.vector_store %arg6[%c24, %c0_26], %21 {strides = array<i32>} : memref<36x288xf32, #tpu.memory_space<vmem>>, vector<4x288xf32>,
    %c0_27 = arith.constant 0 : index
    %c0_28 = arith.constant 0 : index
    %c37 = arith.constant 37 : index
    %23 = vector.load %arg1[%c0_27, %c0_28, %c37] : memref<2x4x326xf32, #tpu.memory_space<vmem>>, vector<1x4x288xf32>
    %24 = vector.shape_cast %23 : vector<1x4x288xf32> to vector<4x288xf32>
    %c28 = arith.constant 28 : index
    %c0_29 = arith.constant 0 : index
    %25 = vector.load %arg6[%c28, %c0_29] : memref<36x288xf32, #tpu.memory_space<vmem>>, vector<4x288xf32>
    tpu.vector_store %arg6[%c28, %c0_29], %24 {strides = array<i32>} : memref<36x288xf32, #tpu.memory_space<vmem>>, vector<4x288xf32>,
    %c0_30 = arith.constant 0 : index
    %c0_31 = arith.constant 0 : index
    %c38 = arith.constant 38 : index
    %26 = vector.load %arg1[%c0_30, %c0_31, %c38] : memref<2x4x326xf32, #tpu.memory_space<vmem>>, vector<1x4x288xf32>
    %27 = vector.shape_cast %26 : vector<1x4x288xf32> to vector<4x288xf32>
    %c32 = arith.constant 32 : index
    %c0_32 = arith.constant 0 : index
    %28 = vector.load %arg6[%c32, %c0_32] : memref<36x288xf32, #tpu.memory_space<vmem>>, vector<4x288xf32>
    tpu.vector_store %arg6[%c32, %c0_32], %27 {strides = array<i32>} : memref<36x288xf32, #tpu.memory_space<vmem>>, vector<4x288xf32>,
    %c0_33 = arith.constant 0 : index
    %c0_34 = arith.constant 0 : index
    %29 = vector.load %arg6[%c0_33, %c0_34] : memref<36x288xf32, #tpu.memory_space<vmem>>, vector<36x288xf32>
    %cst = arith.constant dense<0.000000e+00> : vector<8x288xf32>
    %30 = tpu.matmul %0, %29, %cst {dimension_numbers = #tpu.dot_dimension_numbers<[1], [0], [0], [1], [0, 0, 1, 1], [], []>} : vector<8x36xf32>, vector<36x288xf32>, vector<8x288xf32> -> vector<8x288xf32>
    %31 = vector.broadcast %1 : vector<8x1xf32> to vector<8x288xf32>
    %32 = arith.addf %30, %31 : vector<8x288xf32>
    %cst_35 = arith.constant 0.000000e+00 : f32
    %33 = vector.broadcast %cst_35 : f32 to vector<8x288xf32>
    %34 = arith.maximumf %32, %33 : vector<8x288xf32>
    %c0_36 = arith.constant 0 : index
    %c0_37 = arith.constant 0 : index
    %c0_38 = arith.constant 0 : index
    %35 = vector.load %arg5[%c0_36, %c0_37, %c0_38] : memref<2x8x288xf32, #tpu.memory_space<vmem>>, vector<1x8x288xf32>
    %36 = vector.shape_cast %35 : vector<1x8x288xf32> to vector<8x288xf32>
    %37 = vector.shape_cast %34 : vector<8x288xf32> to vector<1x8x288xf32>
    tpu.vector_store %arg5[%c0_36, %c0_37, %c0_38], %37 {strides = array<i32>} : memref<2x8x288xf32, #tpu.memory_space<vmem>>, vector<1x8x288xf32>,
    %c1_39 = arith.constant 1 : index
    %c0_40 = arith.constant 0 : index
    %c0_41 = arith.constant 0 : index
    %38 = vector.load %arg1[%c1_39, %c0_40, %c0_41] : memref<2x4x326xf32, #tpu.memory_space<vmem>>, vector<1x4x288xf32>
    %39 = vector.shape_cast %38 : vector<1x4x288xf32> to vector<4x288xf32>
    %c0_42 = arith.constant 0 : index
    %c0_43 = arith.constant 0 : index
    %40 = vector.load %arg6[%c0_42, %c0_43] : memref<36x288xf32, #tpu.memory_space<vmem>>, vector<4x288xf32>
    tpu.vector_store %arg6[%c0_42, %c0_43], %39 {strides = array<i32>} : memref<36x288xf32, #tpu.memory_space<vmem>>, vector<4x288xf32>,
    %c1_44 = arith.constant 1 : index
    %c0_45 = arith.constant 0 : index
    %c1_46 = arith.constant 1 : index
    %41 = vector.load %arg1[%c1_44, %c0_45, %c1_46] : memref<2x4x326xf32, #tpu.memory_space<vmem>>, vector<1x4x288xf32>
    %42 = vector.shape_cast %41 : vector<1x4x288xf32> to vector<4x288xf32>
    %c4_47 = arith.constant 4 : index
    %c0_48 = arith.constant 0 : index
    %43 = vector.load %arg6[%c4_47, %c0_48] : memref<36x288xf32, #tpu.memory_space<vmem>>, vector<4x288xf32>
    tpu.vector_store %arg6[%c4_47, %c0_48], %42 {strides = array<i32>} : memref<36x288xf32, #tpu.memory_space<vmem>>, vector<4x288xf32>,
    %c1_49 = arith.constant 1 : index
    %c0_50 = arith.constant 0 : index
    %c2_51 = arith.constant 2 : index
    %44 = vector.load %arg1[%c1_49, %c0_50, %c2_51] : memref<2x4x326xf32, #tpu.memory_space<vmem>>, vector<1x4x288xf32>
    %45 = vector.shape_cast %44 : vector<1x4x288xf32> to vector<4x288xf32>
    %c8_52 = arith.constant 8 : index
    %c0_53 = arith.constant 0 : index
    %46 = vector.load %arg6[%c8_52, %c0_53] : memref<36x288xf32, #tpu.memory_space<vmem>>, vector<4x288xf32>
    tpu.vector_store %arg6[%c8_52, %c0_53], %45 {strides = array<i32>} : memref<36x288xf32, #tpu.memory_space<vmem>>, vector<4x288xf32>,
    %c1_54 = arith.constant 1 : index
    %c0_55 = arith.constant 0 : index
    %c18_56 = arith.constant 18 : index
    %47 = vector.load %arg1[%c1_54, %c0_55, %c18_56] : memref<2x4x326xf32, #tpu.memory_space<vmem>>, vector<1x4x288xf32>
    %48 = vector.shape_cast %47 : vector<1x4x288xf32> to vector<4x288xf32>
    %c12_57 = arith.constant 12 : index
    %c0_58 = arith.constant 0 : index
    %49 = vector.load %arg6[%c12_57, %c0_58] : memref<36x288xf32, #tpu.memory_space<vmem>>, vector<4x288xf32>
    tpu.vector_store %arg6[%c12_57, %c0_58], %48 {strides = array<i32>} : memref<36x288xf32, #tpu.memory_space<vmem>>, vector<4x288xf32>,
    %c1_59 = arith.constant 1 : index
    %c0_60 = arith.constant 0 : index
    %c19_61 = arith.constant 19 : index
    %50 = vector.load %arg1[%c1_59, %c0_60, %c19_61] : memref<2x4x326xf32, #tpu.memory_space<vmem>>, vector<1x4x288xf32>
    %51 = vector.shape_cast %50 : vector<1x4x288xf32> to vector<4x288xf32>
    %c16_62 = arith.constant 16 : index
    %c0_63 = arith.constant 0 : index
    %52 = vector.load %arg6[%c16_62, %c0_63] : memref<36x288xf32, #tpu.memory_space<vmem>>, vector<4x288xf32>
    tpu.vector_store %arg6[%c16_62, %c0_63], %51 {strides = array<i32>} : memref<36x288xf32, #tpu.memory_space<vmem>>, vector<4x288xf32>,
    %c1_64 = arith.constant 1 : index
    %c0_65 = arith.constant 0 : index
    %c20_66 = arith.constant 20 : index
    %53 = vector.load %arg1[%c1_64, %c0_65, %c20_66] : memref<2x4x326xf32, #tpu.memory_space<vmem>>, vector<1x4x288xf32>
    %54 = vector.shape_cast %53 : vector<1x4x288xf32> to vector<4x288xf32>
    %c20_67 = arith.constant 20 : index
    %c0_68 = arith.constant 0 : index
    %55 = vector.load %arg6[%c20_67, %c0_68] : memref<36x288xf32, #tpu.memory_space<vmem>>, vector<4x288xf32>
    tpu.vector_store %arg6[%c20_67, %c0_68], %54 {strides = array<i32>} : memref<36x288xf32, #tpu.memory_space<vmem>>, vector<4x288xf32>,
    %c1_69 = arith.constant 1 : index
    %c0_70 = arith.constant 0 : index
    %c36_71 = arith.constant 36 : index
    %56 = vector.load %arg1[%c1_69, %c0_70, %c36_71] : memref<2x4x326xf32, #tpu.memory_space<vmem>>, vector<1x4x288xf32>
    %57 = vector.shape_cast %56 : vector<1x4x288xf32> to vector<4x288xf32>
    %c24_72 = arith.constant 24 : index
    %c0_73 = arith.constant 0 : index
    %58 = vector.load %arg6[%c24_72, %c0_73] : memref<36x288xf32, #tpu.memory_space<vmem>>, vector<4x288xf32>
    tpu.vector_store %arg6[%c24_72, %c0_73], %57 {strides = array<i32>} : memref<36x288xf32, #tpu.memory_space<vmem>>, vector<4x288xf32>,
    %c1_74 = arith.constant 1 : index
    %c0_75 = arith.constant 0 : index
    %c37_76 = arith.constant 37 : index
    %59 = vector.load %arg1[%c1_74, %c0_75, %c37_76] : memref<2x4x326xf32, #tpu.memory_space<vmem>>, vector<1x4x288xf32>
    %60 = vector.shape_cast %59 : vector<1x4x288xf32> to vector<4x288xf32>
    %c28_77 = arith.constant 28 : index
    %c0_78 = arith.constant 0 : index
    %61 = vector.load %arg6[%c28_77, %c0_78] : memref<36x288xf32, #tpu.memory_space<vmem>>, vector<4x288xf32>
    tpu.vector_store %arg6[%c28_77, %c0_78], %60 {strides = array<i32>} : memref<36x288xf32, #tpu.memory_space<vmem>>, vector<4x288xf32>,
    %c1_79 = arith.constant 1 : index
    %c0_80 = arith.constant 0 : index
    %c38_81 = arith.constant 38 : index
    %62 = vector.load %arg1[%c1_79, %c0_80, %c38_81] : memref<2x4x326xf32, #tpu.memory_space<vmem>>, vector<1x4x288xf32>
    %63 = vector.shape_cast %62 : vector<1x4x288xf32> to vector<4x288xf32>
    %c32_82 = arith.constant 32 : index
    %c0_83 = arith.constant 0 : index
    %64 = vector.load %arg6[%c32_82, %c0_83] : memref<36x288xf32, #tpu.memory_space<vmem>>, vector<4x288xf32>
    tpu.vector_store %arg6[%c32_82, %c0_83], %63 {strides = array<i32>} : memref<36x288xf32, #tpu.memory_space<vmem>>, vector<4x288xf32>,
    %c0_84 = arith.constant 0 : index
    %c0_85 = arith.constant 0 : index
    %65 = vector.load %arg6[%c0_84, %c0_85] : memref<36x288xf32, #tpu.memory_space<vmem>>, vector<36x288xf32>
    %cst_86 = arith.constant dense<0.000000e+00> : vector<8x288xf32>
    %66 = tpu.matmul %0, %65, %cst_86 {dimension_numbers = #tpu.dot_dimension_numbers<[1], [0], [0], [1], [0, 0, 1, 1], [], []>} : vector<8x36xf32>, vector<36x288xf32>, vector<8x288xf32> -> vector<8x288xf32>
    %67 = vector.broadcast %1 : vector<8x1xf32> to vector<8x288xf32>
    %68 = arith.addf %66, %67 : vector<8x288xf32>
    %cst_87 = arith.constant 0.000000e+00 : f32
    %69 = vector.broadcast %cst_87 : f32 to vector<8x288xf32>
    %70 = arith.maximumf %68, %69 : vector<8x288xf32>
    %c1_88 = arith.constant 1 : index
    %c0_89 = arith.constant 0 : index
    %c0_90 = arith.constant 0 : index
    %71 = vector.load %arg5[%c1_88, %c0_89, %c0_90] : memref<2x8x288xf32, #tpu.memory_space<vmem>>, vector<1x8x288xf32>
    %72 = vector.shape_cast %71 : vector<1x8x288xf32> to vector<8x288xf32>
    %73 = vector.shape_cast %70 : vector<8x288xf32> to vector<1x8x288xf32>
    tpu.vector_store %arg5[%c1_88, %c0_89, %c0_90], %73 {strides = array<i32>} : memref<2x8x288xf32, #tpu.memory_space<vmem>>, vector<1x8x288xf32>,
    return
  }
  func.func @transform_0(%arg0: i32) -> (i32, i32, i32) {
    %c0_i32 = arith.constant 0 : i32
    %c0_i32_0 = arith.constant 0 : i32
    %c0_i32_1 = arith.constant 0 : i32
    return %arg0, %c0_i32, %c0_i32_0 : i32, i32, i32
  }
  func.func @transform_1(%arg0: i32) -> (i32, i32) {
    %c0_i32 = arith.constant 0 : i32
    %c0_i32_0 = arith.constant 0 : i32
    %c0_i32_1 = arith.constant 0 : i32
    return %c0_i32, %c0_i32_0 : i32, i32
  }
  func.func @transform_2(%arg0: i32) -> (i32, i32) {
    %c0_i32 = arith.constant 0 : i32
    %c0_i32_0 = arith.constant 0 : i32
    %c0_i32_1 = arith.constant 0 : i32
    return %c0_i32, %c0_i32_0 : i32, i32
  }
  func.func @transform_3(%arg0: i32) -> (i32, i32) {
    %c0_i32 = arith.constant 0 : i32
    %c0_i32_0 = arith.constant 0 : i32
    %c0_i32_1 = arith.constant 0 : i32
    return %c0_i32, %c0_i32_0 : i32, i32
  }
  func.func @transform_4(%arg0: i32) -> (i32, i32, i32) {
    %c0_i32 = arith.constant 0 : i32
    %c0_i32_0 = arith.constant 0 : i32
    %c0_i32_1 = arith.constant 0 : i32
    return %arg0, %c0_i32, %c0_i32_0 : i32, i32, i32
  }
}

</mosaic_0001>

<bundles_post_ra>
// kernel: tile.8
= control target key start
LH: loop header
LB: loop body
LE: loop exit
PB: predicated region body
PF: predicated region fallthrough
CT: control target
= control target key end

     0   :  { %s28_s0 = inlined_call_operand.vmem [shape: f32[18], index: 0, kind: input, shape index: {}]   ;;  %s29_s1 = inlined_call_operand.vmem [shape: f32[16,18], index: 1, kind: output, shape index: {}]  }
   0x1   :  { %v4_v0 = vld [vmem:[%s28_s0] ss:$0 sm:$0xff] }
   0x2   :  { %5 = vst [vmem:[%s29_s1] sm:$0xff] %v4_v0 }
   0x3   :  { %8 = vst [vmem:[%s29_s1 + $0x8] sm:$0xff] %v4_v0 }

// kernel: tile.9
= control target key start
LH: loop header
LB: loop body
LE: loop exit
PB: predicated region body
PF: predicated region fallthrough
CT: control target
= control target key end

     0   :  { %vm9_vm0 = vcmask 15360   ;;  %s169_s10 = smov 108   ;;  %s170_s13 = smov 126   ;;  %vm22_vm1 = vcmask 31744   ;;  %vm3_vm2 = vcmask 146432   ;;  %vm13_vm3 = vcmask 130048   ;;  %s257_s0 = inlined_call_operand.vmem [shape: f32[16,18], index: 0, kind: input, shape index: {}]   ;;  %s258_s1 = inlined_call_operand.vmem [shape: f32[1,288], index: 1, kind: output, shape index: {}]  }
   0x1   :  { %v139_v0 = vld [vmem:[%s257_s0 + $0x6] sm:$0x1]   ;;  %v135_v1 = vld [vmem:[%s257_s0 + $0x7] sm:$0x1]   ;;  %v141_v4 = vld [vmem:[%s257_s0 + $0x5] sm:$0x1]  }
   0x2   :  { %34 = vrot.lane.b32.xlu1 %v139_v0, %s169_s10  ;;  %v136_v2 = vld [vmem:[%s257_s0 + $0x7] sm:$0x1]   ;;  %v137_v5 = vld [vmem:[%s257_s0 + $0xe] sm:$0x1]   ;;  %s171_s20 = smov 90   ;;  %s172_s23 = smov 106  }
   0x3   :  { %v10_v3 = vsel %vm9_vm0, %v136_v2, %v135_v1  ;;  %v138_v6 = vld [vmem:[%s257_s0 + $0xe] sm:$0x1]   ;;  %47 = vrot.lane.b32.xlu2 %v141_v4, %s171_s20  ;;  %v140_v7 = vld [vmem:[%s257_s0 + $0xd] sm:$0x1]   ;;  %v142_v9 = vld [vmem:[%s257_s0 + $0xc] sm:$0x1]  }
   0x4   :  { %11 = vrot.lane.b32.xlu0 %v10_v3, %s170_s13  ;;  %v23_v8 = vsel %vm22_vm1, %v138_v6, %v137_v5  ;;  %s173_s26 = smov 124   ;;  %s174_s27 = smov 88   ;;  %v144_v10 = vld [vmem:[%s257_s0 + $0xb] sm:$0x1]   ;;  %v143_v11 = vld [vmem:[%s257_s0 + $0x4] sm:$0x1]  }
   0x5   :  { %s175_s3 = smov 70   ;;  %v145_v12 = vld [vmem:[%s257_s0 + $0x3] sm:$0x1]   ;;  %s176_s6 = smov 72   ;;  %v147_v13 = vld [vmem:[%s257_s0 + $0x2] sm:$0x1]  }
   0x6   :  { %s177_s7 = smov 54   ;;  %v146_v14 = vld [vmem:[%s257_s0 + $0xa] sm:$0x1]   ;;  %s178_s12 = smov 36   ;;  %v148_v15 = vld [vmem:[%s257_s0 + $0x9] sm:$0x1]  }
   0x7   :  { %s179_s15 = smov 52   ;;  %s180_s16 = smov 34   ;;  %v150_v16 = vld [vmem:[%s257_s0 + $0x8] sm:$0x1]   ;;  %v149_v17 = vld [vmem:[%s257_s0 + $0x1] sm:$0x1]  }
   0x8   :  { %s181_s21 = smov 16   ;;  %v151_v18 = vld [vmem:[%s257_s0 + $0xf] sm:$0x1]   ;;  %s182_s24 = smov 18   ;;  %v2_v19 = vld [vmem:[%s257_s0] sm:$0x1]  }
   0x9   :  { %s183_s25 = smov 14   ;;  %4 = vst.msk [vmem:[#allocation0] sm:$0x1] %vm3_vm2, %v2_v19   ;;  %vm16_vm4 = vcmask 1048560   ;;  %vm36_vm5 = vcmask 1032032   ;;  %vm49_vm6 = vcmask 884432  }
   0xa   :  { %40 = vrot.lane.b32.xlu1 %v140_v7, %s172_s23  ;;  %vm26_vm7 = vcmask 113664   ;;  %vm29_vm8 = vcmask 1048544   ;;  %vm42_vm9 = vcmask 1015632   ;;  %vm55_vm10 = vcmask 868032  }
   0xb   :  { %53 = vrot.lane.b32.xlu2 %v142_v9, %s174_s27  ;;  %vm114_vm11 = vcmask 261232   ;;  %vm68_vm12 = vcmask 720432   ;;  %vm62_vm13 = vcmask 736832   ;;  %vm75_vm14 = vcmask 589232  }
   0xc   :  { %24 = vrot.lane.b32.xlu0 %v23_v8, %s173_s26  ;;  %vm88_vm15 = vcmask 441632   ;;  %vm81_vm0 = vcmask 572832   ;;  %vm94_vm1 = vcmask 425232   ;;  %vm107_vm2 = vcmask 277632  }
  0x12   :  { %66 = vrot.lane.b32.xlu1 %v144_v10, %s175_s3 }
  0x13   :  { %73 = vrot.lane.b32.xlu2 %v145_v12, %s177_s7 }
  0x14   :  { %60 = vrot.lane.b32.xlu0 %v143_v11, %s176_s6 }
  0x1a   :  { %86 = vrot.lane.b32.xlu1 %v147_v13, %s178_s12 }
  0x1b   :  { %92 = vrot.lane.b32.xlu2 %v148_v15, %s180_s16 }
  0x1c   :  { %79 = vrot.lane.b32.xlu0 %v146_v14, %s179_s15 }
  0x22   :  { %105 = vrot.lane.b32.xlu1 %v150_v16, %s181_s21 }
  0x23   :  { %112 = vrot.lane.b32.xlu2 %v151_v18, %s183_s25 }
  0x24   :  { %99 = vrot.lane.b32.xlu0 %v149_v17, %s182_s24 }
  0x5d   :  { %v48_v20 = vpop.permute.xlu2 %47  }
  0x65   :  { %v54_v21 = vpop.permute.xlu2 %53  }
  0x6d   :  { %v74_v22 = vpop.permute.xlu2 %73  }
  0x74   :  { %v35_v23 = vpop.permute.xlu1 %34  }
  0x75   :  { %v93_v25 = vpop.permute.xlu2 %92  }
  0x76   :  { %v12_v24 = vpop.permute.xlu0 %11  }
  0x77   :  { %15 = vst.msk [vmem:[#allocation0 + $0x8] sm:$0x1] %vm13_vm3, %v12_v24   ;;  %vm101_vm3 = vcmask 294032  }
  0x78   :  { %17 = vst.msk [vmem:[#allocation0] sm:$0x1] %vm16_vm4, %v12_v24  }
  0x79   :  { %37 = vst.msk [vmem:[#allocation0] sm:$0x1] %vm36_vm5, %v35_v23  }
  0x7a   :  { %50 = vst.msk [vmem:[#allocation0] sm:$0x1] %vm49_vm6, %v48_v20  }
  0x7c   :  { %v41_v26 = vpop.permute.xlu1 %40  }
  0x7d   :  { %v113_v28 = vpop.permute.xlu2 %112  }
  0x7e   :  { %v25_v27 = vpop.permute.xlu0 %24  }
  0x7f   :  { %28 = vst.msk [vmem:[#allocation0 + $0x10] sm:$0x1] %vm26_vm7, %v25_v27  }
  0x80   :  { %31 = vst.msk [vmem:[#allocation0 + $0x8] sm:$0x1] %vm29_vm8, %v25_v27  }
  0x81   :  { %44 = vst.msk [vmem:[#allocation0 + $0x8] sm:$0x1] %vm42_vm9, %v41_v26  }
  0x82   :  { %57 = vst.msk [vmem:[#allocation0 + $0x8] sm:$0x1] %vm55_vm10, %v54_v21  }
  0x83   :  { %116 = vst.msk [vmem:[#allocation0 + $0x10] sm:$0x1] %vm114_vm11, %v113_v28  }
  0x84   :  { %v67_v29 = vpop.permute.xlu1 %66  }
  0x85   :  { %70 = vst.msk [vmem:[#allocation0 + $0x8] sm:$0x1] %vm68_vm12, %v67_v29  }
  0x86   :  { %v61_v30 = vpop.permute.xlu0 %60  }
  0x87   :  { %63 = vst.msk [vmem:[#allocation0] sm:$0x1] %vm62_vm13, %v61_v30  }
  0x88   :  { %76 = vst.msk [vmem:[#allocation0] sm:$0x1] %vm75_vm14, %v74_v22  }
  0x8a   :  { %v130_v31 = vld [vmem:[#allocation0 + $0x10] sm:$0x1] }
  0x8b   :  { %153 = vst [vmem:[%s258_s1 + $0x2] sm:$0x1] %v130_v31 }
  0x8c   :  { %v87_v32 = vpop.permute.xlu1 %86  }
  0x8d   :  { %89 = vst.msk [vmem:[#allocation0] sm:$0x1] %vm88_vm15, %v87_v32  }
  0x8e   :  { %v80_v33 = vpop.permute.xlu0 %79  }
  0x8f   :  { %83 = vst.msk [vmem:[#allocation0 + $0x8] sm:$0x1] %vm81_vm0, %v80_v33  }
  0x90   :  { %96 = vst.msk [vmem:[#allocation0 + $0x8] sm:$0x1] %vm94_vm1, %v93_v25  }
  0x94   :  { %v106_v34 = vpop.permute.xlu1 %105  }
  0x95   :  { %109 = vst.msk [vmem:[#allocation0 + $0x8] sm:$0x1] %vm107_vm2, %v106_v34  }
  0x96   :  { %v100_v35 = vpop.permute.xlu0 %99  }
  0x97   :  { %102 = vst.msk [vmem:[#allocation0] sm:$0x1] %vm101_vm3, %v100_v35  }
  0x9c   :  { %v124_v36 = vld [vmem:[#allocation0 + $0x8] sm:$0x1] }
  0x9d   :  { %152 = vst [vmem:[%s258_s1 + $0x1] sm:$0x1] %v124_v36 }
  0x9e   :  { %v119_v37 = vld [vmem:[#allocation0] sm:$0x1] }
  0x9f   :  { %122 = vst [vmem:[%s258_s1] sm:$0x1] %v119_v37 }

// kernel: _lambda_.1
= control target key start
LH: loop header
LB: loop body
LE: loop exit
PB: predicated region body
PF: predicated region fallthrough
CT: control target
= control target key end

     0   :  { %s693_s20 = smov 127   ;;  %s694_s23 = smov 126   ;;  %vm34_vm0 = vcmask 257024   ;;  %vm53_vm1 = vcmask 1039360   ;;  %vm79_vm2 = vcmask 1031168   ;;  %vm105_vm3 = vcmask 900096   ;;  %s991_s0 = inlined_call_operand.vmem [shape: f32[2,4,326], index: 0, kind: input, shape index: {}]   ;;  %s992_s3 = inlined_call_operand.vmem [shape: f32[1,288], index: 3, kind: input, shape index: {}]   ;;  %s993_s1 = inlined_call_operand.vmem [shape: f32[8,36], index: 1, kind: input, shape index: {}]   ;;  %s994_s2 = inlined_call_operand.vmem [shape: f32[8,1], index: 2, kind: input, shape index: {}]   ;;  %s995_s4 = inlined_call_operand.vmem [shape: f32[2,8,288], index: 4, kind: output, shape index: {}]  }
   0x1   :  { %v730_v0 = vld [vmem:[%s991_s0] sm:$0xff]  ;;  %v20_v1 = vld [vmem:[%s991_s0 + $0x8] sm:$0xf]  ;;  %s695_s26 = smov 110   ;;  %s696_s5 = smov 109   ;;  %v791_v34 = vld [vmem:[%s991_s0 + $0xc] sm:$0xff] }
   0x2   :  { %23 = vst [vmem:[#allocation1] ss:$2 sm:$0xff] %v730_v0  ;;  %v37_v2 = vld [vmem:[%s991_s0 + $0x8] sm:$0xf]  ;;  %s697_s6 = smov 108   ;;  %s698_s11 = smov 92  }
   0x3   :  { %25 = vst [vmem:[#allocation1 + $0x10] ss:$2 sm:$0xff] %v20_v1  ;;  %v64_v8 = vld [vmem:[%s991_s0 + $0x8] sm:$0xf]  ;;  %s699_s14 = smov 91   ;;  %s700_s21 = smov 90  }
   0x4   :  { %v89_v12 = vld [vmem:[%s991_s0 + $0x8] sm:$0xf]  ;;  %v657_v37 = vld [vmem:[%s991_s0 + $0x14] sm:$0xf]  ;;  %vm61_vm4 = vcmask 261124   ;;  %vm130_vm5 = vcmask 891904  }
   0x5   :  { %v115_v16 = vld [vmem:[%s991_s0 + $0x8] sm:$0xf]  ;;  %v659_v41 = vld [vmem:[%s991_s0 + $0x14] sm:$0xf]  ;;  %vm207_vm6 = vcmask 744448   ;;  %vm156_vm7 = vcmask 883712  }
   0x6   :  { %v140_v20 = vld [vmem:[%s991_s0 + $0x8] sm:$0xf]  ;;  %v661_v45 = vld [vmem:[%s991_s0 + $0x14] sm:$0xf]  ;;  %vm265_vm8 = vcmask 1043456   ;;  %vm181_vm9 = vcmask 752640  }
   0x7   :  { %v166_v24 = vld [vmem:[%s991_s0 + $0x8] sm:$0xf]  ;;  %v663_v49 = vld [vmem:[%s991_s0 + $0x14] sm:$0xf]  ;;  %vm232_vm10 = vcmask 736256   ;;  %vm261_vm11 = vcmask 293888  }
   0x8   :  { %v191_v28 = vld [vmem:[%s991_s0 + $0x8] sm:$0xf]  ;;  %v665_v53 = vld [vmem:[%s991_s0 + $0x14] sm:$0xf]  ;;  %vm340_vm12 = vcmask 261120  }
   0x9   :  { %v26_v3 = vld.sshfl [vmem:[#allocation1] sm:$0xff pattern:$0x75316420]  ;;  %v27_v4 = vld.sshfl [vmem:[#allocation1 + $0x8] sm:$0xff pattern:$0x75316420] }
   0xa   :  { %41 = vst [vmem:[#allocation1 + $0x1] ss:$2 sm:$0xff] %v730_v0  ;;  %v740_v5 = vld.sshfl [vmem:[#allocation1 + $0x10] sm:$0xff pattern:$0x75316420] }
   0xb   :  { %32 = vst [vmem:[#allocation2] sm:$0xf] %v26_v3  ;;  %v217_v32 = vld [vmem:[%s991_s0 + $0x8] sm:$0xf]  ;;  %v667_v57 = vld [vmem:[%s991_s0 + $0x14] sm:$0xf] }
   0xc   :  { %33 = vst [vmem:[#allocation2 + $0x8] sm:$0xf] %v27_v4  ;;  %v669_v61 = vld [vmem:[%s991_s0 + $0x14] sm:$0xf] }
   0xd   :  { %43 = vst [vmem:[#allocation1 + $0x11] ss:$2 sm:$0xff] %v37_v2  ;;  %v671_v1 = vld [vmem:[%s991_s0 + $0x14] sm:$0xf] }
   0xe   :  { %35 = vst.msk [vmem:[#allocation2 + $0x10] sm:$0xf] %vm34_vm0, %v740_v5 }
  0x11   :  { %v45_v6 = vld.sshfl [vmem:[#allocation1 + $0x8] sm:$0xff pattern:$0x75316420]  ;;  %v44_v7 = vld.sshfl [vmem:[#allocation1] sm:$0xff pattern:$0x75316420] }
  0x12   :  { %49 = vrot.lane.b32.xlu1 %v45_v6, %s693_s20  ;;  %47 = vrot.lane.b32.xlu0 %v44_v7, %s693_s20  ;;  %67 = vst [vmem:[#allocation1] ss:$2 sm:$0xff] %v730_v0 }
  0x14   :  { %v46_v9 = vld.sshfl [vmem:[#allocation1 + $0x10] sm:$0xff pattern:$0x75316420] }
  0x15   :  { %69 = vst [vmem:[#allocation1 + $0x10] ss:$2 sm:$0xff] %v64_v8 }
  0x19   :  { %v70_v10 = vld.sshfl [vmem:[#allocation1] sm:$0xff pattern:$0x75316420]  ;;  %v71_v11 = vld.sshfl [vmem:[#allocation1 + $0x8] sm:$0xff pattern:$0x75316420] }
  0x1a   :  { %73 = vrot.lane.b32.xlu1 %v70_v10, %s694_s23  ;;  %93 = vst [vmem:[#allocation1 + $0x1] ss:$2 sm:$0xff] %v730_v0  ;;  %75 = vrot.lane.b32.xlu2 %v71_v11, %s694_s23 }
  0x1c   :  { %v72_v13 = vld.sshfl [vmem:[#allocation1 + $0x10] sm:$0xff pattern:$0x75316420] }
  0x1d   :  { %77 = vrot.lane.b32.xlu0 %v72_v13, %s694_s23  ;;  %95 = vst [vmem:[#allocation1 + $0x11] ss:$2 sm:$0xff] %v89_v12 }
  0x21   :  { %v97_v14 = vld.sshfl [vmem:[#allocation1 + $0x8] sm:$0xff pattern:$0x75316420]  ;;  %v96_v15 = vld.sshfl [vmem:[#allocation1] sm:$0xff pattern:$0x75316420] }
  0x22   :  { %101 = vrot.lane.b32.xlu1 %v97_v14, %s695_s26  ;;  %118 = vst [vmem:[#allocation1] ss:$2 sm:$0xff] %v730_v0 }
  0x24   :  { %v98_v17 = vld.sshfl [vmem:[#allocation1 + $0x10] sm:$0xff pattern:$0x75316420] }
  0x25   :  { %99 = vrot.lane.b32.xlu0 %v96_v15, %s695_s26  ;;  %120 = vst [vmem:[#allocation1 + $0x10] ss:$2 sm:$0xff] %v115_v16 }
  0x29   :  { %v121_v18 = vld.sshfl [vmem:[#allocation1] sm:$0xff pattern:$0x75316420]  ;;  %v122_v19 = vld.sshfl [vmem:[#allocation1 + $0x8] sm:$0xff pattern:$0x75316420] }
  0x2a   :  { %103 = vrot.lane.b32.xlu1 %v98_v17, %s695_s26  ;;  %144 = vst [vmem:[#allocation1 + $0x1] ss:$2 sm:$0xff] %v730_v0 }
  0x2c   :  { %v123_v21 = vld.sshfl [vmem:[#allocation1 + $0x10] sm:$0xff pattern:$0x75316420] }
  0x2d   :  { %124 = vrot.lane.b32.xlu0 %v121_v18, %s696_s5  ;;  %146 = vst [vmem:[#allocation1 + $0x11] ss:$2 sm:$0xff] %v140_v20 }
  0x31   :  { %v148_v22 = vld.sshfl [vmem:[#allocation1 + $0x8] sm:$0xff pattern:$0x75316420]  ;;  %v147_v23 = vld.sshfl [vmem:[#allocation1] sm:$0xff pattern:$0x75316420] }
  0x32   :  { %126 = vrot.lane.b32.xlu1 %v122_v19, %s696_s5  ;;  %150 = vrot.lane.b32.xlu2 %v147_v23, %s697_s6  ;;  %169 = vst [vmem:[#allocation1] ss:$2 sm:$0xff] %v730_v0 }
  0x34   :  { %v149_v25 = vld.sshfl [vmem:[#allocation1 + $0x10] sm:$0xff pattern:$0x75316420] }
  0x35   :  { %128 = vrot.lane.b32.xlu0 %v123_v21, %s696_s5  ;;  %171 = vst [vmem:[#allocation1 + $0x10] ss:$2 sm:$0xff] %v166_v24 }
  0x39   :  { %v172_v26 = vld.sshfl [vmem:[#allocation1] sm:$0xff pattern:$0x75316420]  ;;  %v173_v27 = vld.sshfl [vmem:[#allocation1 + $0x8] sm:$0xff pattern:$0x75316420] }
  0x3a   :  { %154 = vrot.lane.b32.xlu1 %v149_v25, %s697_s6  ;;  %195 = vst [vmem:[#allocation1 + $0x1] ss:$2 sm:$0xff] %v730_v0 }
  0x3c   :  { %v174_v29 = vld.sshfl [vmem:[#allocation1 + $0x10] sm:$0xff pattern:$0x75316420] }
  0x3d   :  { %152 = vrot.lane.b32.xlu0 %v148_v22, %s697_s6  ;;  %179 = vrot.lane.b32.xlu2 %v174_v29, %s698_s11  ;;  %197 = vst [vmem:[#allocation1 + $0x11] ss:$2 sm:$0xff] %v191_v28 }
  0x41   :  { %v198_v30 = vld.sshfl [vmem:[#allocation1] sm:$0xff pattern:$0x75316420]  ;;  %v199_v31 = vld.sshfl [vmem:[#allocation1 + $0x8] sm:$0xff pattern:$0x75316420] }
  0x42   :  { %175 = vrot.lane.b32.xlu1 %v172_v26, %s698_s11  ;;  %220 = vst [vmem:[#allocation1] ss:$2 sm:$0xff] %v730_v0 }
  0x44   :  { %v200_v33 = vld.sshfl [vmem:[#allocation1 + $0x10] sm:$0xff pattern:$0x75316420] }
  0x45   :  { %51 = vrot.lane.b32.xlu0 %v46_v9, %s693_s20  ;;  %201 = vrot.lane.b32.xlu2 %v198_v30, %s699_s14  ;;  %222 = vst [vmem:[#allocation1 + $0x10] ss:$2 sm:$0xff] %v217_v32  ;;  %v673_v9 = vld [vmem:[%s991_s0 + $0x14] sm:$0xf] }
  0x49   :  { %v223_v35 = vld.sshfl [vmem:[#allocation1] sm:$0xff pattern:$0x75316420]  ;;  %v224_v36 = vld.sshfl [vmem:[#allocation1 + $0x8] sm:$0xff pattern:$0x75316420] }
  0x4a   :  { %177 = vrot.lane.b32.xlu1 %v173_v27, %s698_s11  ;;  %347 = vst [vmem:[#allocation1] ss:$2 sm:$0xff] %v791_v34 }
  0x4c   :  { %v225_v38 = vld.sshfl [vmem:[#allocation1 + $0x10] sm:$0xff pattern:$0x75316420] }
  0x4d   :  { %205 = vrot.lane.b32.xlu0 %v200_v33, %s699_s14  ;;  %203 = vrot.lane.b32.xlu2 %v199_v31, %s699_s14  ;;  %349 = vst [vmem:[#allocation1 + $0x10] ss:$2 sm:$0xff] %v657_v37 }
  0x51   :  { %v800_v39 = vld.sshfl [vmem:[#allocation1] sm:$0xff pattern:$0x75316420]  ;;  %v802_v40 = vld.sshfl [vmem:[#allocation1 + $0x8] sm:$0xff pattern:$0x75316420] }
  0x52   :  { %364 = vst [vmem:[#allocation1 + $0x1] ss:$2 sm:$0xff] %v791_v34 }
  0x54   :  { %v808_v42 = vld.sshfl [vmem:[#allocation1 + $0x10] sm:$0xff pattern:$0x75316420] }
  0x55   :  { %226 = vrot.lane.b32.xlu0 %v223_v35, %s700_s21  ;;  %366 = vst [vmem:[#allocation1 + $0x11] ss:$2 sm:$0xff] %v659_v41  ;;  %230 = vrot.lane.b32.xlu2 %v225_v38, %s700_s21 }
  0x59   :  { %v368_v43 = vld.sshfl [vmem:[#allocation1 + $0x8] sm:$0xff pattern:$0x75316420]  ;;  %v367_v44 = vld.sshfl [vmem:[#allocation1] sm:$0xff pattern:$0x75316420] }
  0x5a   :  { %372 = vrot.lane.b32.xlu1 %v368_v43, %s693_s20  ;;  %388 = vst [vmem:[#allocation1] ss:$2 sm:$0xff] %v791_v34 }
  0x5c   :  { %v817_v46 = vld.sshfl [vmem:[#allocation1 + $0x10] sm:$0xff pattern:$0x75316420] }
  0x5d   :  { %228 = vrot.lane.b32.xlu0 %v224_v36, %s700_s21  ;;  %390 = vst [vmem:[#allocation1 + $0x10] ss:$2 sm:$0xff] %v661_v45 }
  0x61   :  { %v391_v47 = vld.sshfl [vmem:[#allocation1] sm:$0xff pattern:$0x75316420]  ;;  %v392_v48 = vld.sshfl [vmem:[#allocation1 + $0x8] sm:$0xff pattern:$0x75316420] }
  0x62   :  { %394 = vrot.lane.b32.xlu1 %v391_v47, %s694_s23  ;;  %396 = vrot.lane.b32.xlu2 %v392_v48, %s694_s23  ;;  %413 = vst [vmem:[#allocation1 + $0x1] ss:$2 sm:$0xff] %v791_v34 }
  0x64   :  { %v826_v50 = vld.sshfl [vmem:[#allocation1 + $0x10] sm:$0xff pattern:$0x75316420] }
  0x65   :  { %415 = vst [vmem:[#allocation1 + $0x11] ss:$2 sm:$0xff] %v663_v49  ;;  %370 = vrot.lane.b32.xlu0 %v367_v44, %s693_s20 }
  0x69   :  { %v417_v51 = vld.sshfl [vmem:[#allocation1 + $0x8] sm:$0xff pattern:$0x75316420]  ;;  %v416_v52 = vld.sshfl [vmem:[#allocation1] sm:$0xff pattern:$0x75316420] }
  0x6a   :  { %421 = vrot.lane.b32.xlu1 %v417_v51, %s695_s26  ;;  %437 = vst [vmem:[#allocation1] ss:$2 sm:$0xff] %v791_v34 }
  0x6c   :  { %v834_v54 = vld.sshfl [vmem:[#allocation1 + $0x10] sm:$0xff pattern:$0x75316420] }
  0x6d   :  { %439 = vst [vmem:[#allocation1 + $0x10] ss:$2 sm:$0xff] %v665_v53  ;;  %419 = vrot.lane.b32.xlu0 %v416_v52, %s695_s26 }
  0x71   :  { %v441_v55 = vld.sshfl [vmem:[#allocation1 + $0x8] sm:$0xff pattern:$0x75316420]  ;;  %v440_v56 = vld.sshfl [vmem:[#allocation1] sm:$0xff pattern:$0x75316420] }
  0x72   :  { %443 = vrot.lane.b32.xlu2 %v440_v56, %s696_s5  ;;  %462 = vst [vmem:[#allocation1 + $0x1] ss:$2 sm:$0xff] %v791_v34 }
  0x74   :  { %v442_v58 = vld.sshfl [vmem:[#allocation1 + $0x10] sm:$0xff pattern:$0x75316420]  ;;  %v76_v2 = vpop.permute.xlu2 %75 }
  0x75   :  { %464 = vst [vmem:[#allocation1 + $0x11] ss:$2 sm:$0xff] %v667_v57  ;;  %445 = vrot.lane.b32.xlu0 %v441_v55, %s696_s5 }
  0x79   :  { %v466_v59 = vld.sshfl [vmem:[#allocation1 + $0x8] sm:$0xff pattern:$0x75316420]  ;;  %v465_v60 = vld.sshfl [vmem:[#allocation1] sm:$0xff pattern:$0x75316420] }
  0x7a   :  { %470 = vrot.lane.b32.xlu2 %v466_v59, %s697_s6  ;;  %468 = vrot.lane.b32.xlu1 %v465_v60, %s697_s6  ;;  %486 = vst [vmem:[#allocation1] ss:$2 sm:$0xff] %v791_v34 }
  0x7c   :  { %v467_v62 = vld.sshfl [vmem:[#allocation1 + $0x10] sm:$0xff pattern:$0x75316420] }
  0x7d   :  { %488 = vst [vmem:[#allocation1 + $0x10] ss:$2 sm:$0xff] %v669_v61 }
  0x81   :  { %v490_v63 = vld.sshfl [vmem:[#allocation1 + $0x8] sm:$0xff pattern:$0x75316420]  ;;  %v489_v0 = vld.sshfl [vmem:[#allocation1] sm:$0xff pattern:$0x75316420] }
  0x82   :  { %494 = vrot.lane.b32.xlu0 %v490_v63, %s698_s11  ;;  %492 = vrot.lane.b32.xlu2 %v489_v0, %s698_s11  ;;  %511 = vst [vmem:[#allocation1 + $0x1] ss:$2 sm:$0xff] %v791_v34 }
  0x84   :  { %v857_v3 = vpop.permute.xlu1 %49  ;;  %v48_v4 = vpop.permute.xlu0 %47  ;;  %v491_v5 = vld.sshfl [vmem:[#allocation1 + $0x10] sm:$0xff pattern:$0x75316420] }
  0x85   :  { %v54_v6 = vsel %vm53_vm1, %v48_v4, %v857_v3  ;;  %513 = vst [vmem:[#allocation1 + $0x11] ss:$2 sm:$0xff] %v671_v1 }
  0x86   :  { %59 = vst [vmem:[#allocation2] sm:$0xf0] %v54_v6 }
  0x89   :  { %v514_v7 = vld.sshfl [vmem:[#allocation1] sm:$0xff pattern:$0x75316420]  ;;  %v515_v8 = vld.sshfl [vmem:[#allocation1 + $0x8] sm:$0xff pattern:$0x75316420] }
  0x8a   :  { %496 = vrot.lane.b32.xlu2 %v491_v5, %s698_s11  ;;  %517 = vrot.lane.b32.xlu1 %v514_v7, %s699_s14  ;;  %535 = vst [vmem:[#allocation1] ss:$2 sm:$0xff] %v791_v34 }
  0x8c   :  { %v516_v10 = vld.sshfl [vmem:[#allocation1 + $0x10] sm:$0xff pattern:$0x75316420]  ;;  %v74_v11 = vpop.permute.xlu1 %73  ;;  %v151_v13 = vpop.permute.xlu2 %150 }
  0x8d   :  { %521 = vrot.lane.b32.xlu0 %v516_v10, %s699_s14  ;;  %v80_v12 = vsel %vm79_vm2, %v74_v11, %v76_v2  ;;  %537 = vst [vmem:[#allocation1 + $0x10] ss:$2 sm:$0xff] %v673_v9  ;;  %v869_v14 = vld [vmem:[#allocation2] sm:$0xff] }
  0x8e   :  { %85 = vst [vmem:[#allocation2 + $0x18] sm:$0xf] %v80_v12 }
  0x8f   :  { %v78_v15 = vpop.permute.xlu0 %77  ;;  %356 = vst [vmem:[#allocation2] sm:$0xf] %v800_v39 }
  0x90   :  { %87 = vst.msk [vmem:[#allocation2 + $0x28] sm:$0xf] %vm34_vm0, %v78_v15  ;;  %v81_v16 = vsel %vm79_vm2, %v76_v2, %v78_v15 }
  0x91   :  { %86 = vst [vmem:[#allocation2 + $0x20] sm:$0xf] %v81_v16  ;;  %v538_v17 = vld.sshfl [vmem:[#allocation1] sm:$0xff pattern:$0x75316420] }
  0x92   :  { %519 = vrot.lane.b32.xlu2 %v515_v8, %s699_s14  ;;  %541 = vrot.lane.b32.xlu1 %v538_v17, %s700_s21  ;;  %v539_v25 = vld.sshfl [vmem:[#allocation1 + $0x8] sm:$0xff pattern:$0x75316420] }
  0x94   :  { %v102_v18 = vpop.permute.xlu1 %101  ;;  %v540_v30 = vld.sshfl [vmem:[#allocation1 + $0x10] sm:$0xff pattern:$0x75316420] }
  0x95   :  { %398 = vrot.lane.b32.xlu0 %v826_v50, %s694_s23 }
  0x97   :  { %v100_v19 = vpop.permute.xlu0 %99  ;;  %v180_v20 = vpop.permute.xlu2 %179 }
  0x98   :  { %v106_v21 = vsel %vm105_vm3, %v100_v19, %v102_v18  ;;  %189 = vst.msk [vmem:[#allocation2 + $0x58] sm:$0xf] %vm34_vm0, %v180_v20 }
  0x99   :  { %111 = vst [vmem:[#allocation2 + $0x18] sm:$0xf0] %v106_v21 }
  0x9a   :  { %472 = vrot.lane.b32.xlu2 %v467_v62, %s697_s6  ;;  %447 = vrot.lane.b32.xlu1 %v442_v58, %s696_s5 }
  0x9c   :  { %v104_v22 = vpop.permute.xlu1 %103 }
  0x9d   :  { %v107_v23 = vsel %vm105_vm3, %v102_v18, %v104_v22  ;;  %113 = vst.msk [vmem:[#allocation2 + $0x28] sm:$0xf0] %vm61_vm4, %v104_v22 }
  0x9e   :  { %112 = vst [vmem:[#allocation2 + $0x20] sm:$0xf0] %v107_v23 }
  0x9f   :  { %v125_v24 = vpop.permute.xlu0 %124  ;;  %v202_v26 = vpop.permute.xlu2 %201 }
  0xa0   :  { %v244_v63 = vld [vmem:[#allocation2 + $0x18] sm:$0xff] }
  0xa2   :  { %543 = vrot.lane.b32.xlu2 %v539_v25, %s700_s21  ;;  %423 = vrot.lane.b32.xlu1 %v834_v54, %s695_s26 }
  0xa4   :  { %v127_v27 = vpop.permute.xlu1 %126  ;;  %v246_v56 = vld [vmem:[#allocation2 + $0x28] sm:$0xff] }
  0xa5   :  { %v131_v28 = vsel %vm130_vm5, %v125_v24, %v127_v27  ;;  %v245_v10 = vld [vmem:[#allocation2 + $0x20] sm:$0xff]  ;;  %v936_v24 = vld [vmem:[%s993_s1] sm:$0xff] }
  0xa6   :  { %136 = vst [vmem:[#allocation2 + $0x30] sm:$0xf] %v131_v28 }
  0xa7   :  { %v129_v29 = vpop.permute.xlu0 %128  ;;  %v204_v31 = vpop.permute.xlu2 %203 }
  0xa8   :  { %v132_v32 = vsel %vm130_vm5, %v127_v27, %v129_v29  ;;  %138 = vst.msk [vmem:[#allocation2 + $0x40] sm:$0xf] %vm34_vm0, %v129_v29  ;;  %v208_v33 = vsel %vm207_vm6, %v202_v26, %v204_v31 }
  0xa9   :  { %137 = vst [vmem:[#allocation2 + $0x38] sm:$0xf] %v132_v32 }
  0xaa   :  { %545 = vrot.lane.b32.xlu2 %v540_v30, %s700_s21  ;;  %213 = vst [vmem:[#allocation2 + $0x48] sm:$0xf0] %v208_v33  ;;  %v18_v30 = vld [vmem:[%s994_s2] sm:$0xff] }
  0xac   :  { %v155_v34 = vpop.permute.xlu1 %154 }
  0xad   :  { %164 = vst.msk [vmem:[#allocation2 + $0x40] sm:$0xf0] %vm61_vm4, %v155_v34 }
  0xaf   :  { %v153_v35 = vpop.permute.xlu0 %152  ;;  %v231_v36 = vpop.permute.xlu2 %230 }
  0xb0   :  { %v157_v37 = vsel %vm156_vm7, %v151_v13, %v153_v35  ;;  %v158_v38 = vsel %vm156_vm7, %v153_v35, %v155_v34  ;;  %240 = vst.msk [vmem:[#allocation2 + $0x70] sm:$0xf] %vm34_vm0, %v231_v36 }
  0xb1   :  { %162 = vst [vmem:[#allocation2 + $0x30] sm:$0xf0] %v157_v37 }
  0xb2   :  { %163 = vst [vmem:[#allocation2 + $0x38] sm:$0xf0] %v158_v38  ;;  %374 = vrot.lane.b32.xlu2 %v817_v46, %s693_s20 }
  0xb4   :  { %v176_v39 = vpop.permute.xlu1 %175  ;;  %v249_v55 = vld [vmem:[#allocation2 + $0x40] sm:$0xff] }
  0xb7   :  { %v52_v41 = vpop.permute.xlu0 %51  ;;  %v255_v43 = vld [vmem:[#allocation2 + $0x70] sm:$0xf] }
  0xb8   :  { %v55_v44 = vsel %vm53_vm1, %v857_v3, %v52_v41  ;;  %62 = vst.msk [vmem:[#allocation2 + $0x10] sm:$0xf0] %vm61_vm4, %v52_v41  ;;  %654 = vmatpush.msk.msra.mxu2 %vm265_vm8, %v255_v43  ;;  %v247_v6 = vld [vmem:[#allocation2 + $0x30] sm:$0xff] }
  0xb9   :  { %60 = vst [vmem:[#allocation2 + $0x8] sm:$0xf0] %v55_v44  ;;  %v248_v8 = vld [vmem:[#allocation2 + $0x38] sm:$0xff] }
  0xbc   :  { %v178_v45 = vpop.permute.xlu1 %177  ;;  %v906_v51 = vpop.permute.xlu2 %396 }
  0xbd   :  { %v182_v47 = vsel %vm181_vm9, %v176_v39, %v178_v45  ;;  %v183_v48 = vsel %vm181_vm9, %v178_v45, %v180_v20 }
  0xbe   :  { %187 = vst [vmem:[#allocation2 + $0x48] sm:$0xf] %v182_v47 }
  0xbf   :  { %v206_v46 = vpop.permute.xlu0 %205  ;;  %188 = vst [vmem:[#allocation2 + $0x50] sm:$0xf] %v183_v48  ;;  %v243_v50 = vld [vmem:[#allocation2 + $0x10] sm:$0xff] }
  0xc0   :  { %v209_v49 = vsel %vm207_vm6, %v204_v31, %v206_v46  ;;  %215 = vst.msk [vmem:[#allocation2 + $0x58] sm:$0xf0] %vm61_vm4, %v206_v46  ;;  %v242_v52 = vld [vmem:[#allocation2 + $0x8] sm:$0xff]  ;;  %v701_v31 = vmov 0  }
  0xc1   :  { %214 = vst [vmem:[#allocation2 + $0x50] sm:$0xf0] %v209_v49  ;;  %692 = vset.pattern.permute.xlu0 %v701_v31 }
  0xc2   :  { %358 = vst.msk [vmem:[#allocation2 + $0x10] sm:$0xf] %vm34_vm0, %v808_v42  ;;  %258 = vperm.xlu0 %692, %v18_v30  }
  0xc3   :  { %357 = vst [vmem:[#allocation2 + $0x8] sm:$0xf] %v802_v40 }
  0xc5   :  { %v250_v4 = vld [vmem:[#allocation2 + $0x48] sm:$0xff] }
  0xc7   :  { %v227_v53 = vpop.permute.xlu0 %226  ;;  %v252_v54 = vld [vmem:[#allocation2 + $0x58] sm:$0xff] }
  0xc8   :  { %327 = vmatpush.msra.mxu2 %v252_v54  ;;  %v251_v5 = vld [vmem:[#allocation2 + $0x50] sm:$0xff] }
  0xca   :  { %328 = vmatpush.msra.mxu2 %v249_v55 }
  0xcc   :  { %329 = vmatpush.msra.mxu2 %v246_v56  ;;  %v911_v57 = vpop.permute.xlu1 %372  ;;  %v444_v58 = vpop.permute.xlu2 %443 }
  0xce   :  { %330 = vmatpush.msra.mxu2 %v243_v50 }
  0xcf   :  { %v229_v59 = vpop.permute.xlu0 %228  ;;  %655 = vmatmul.msk.f32.vlgmr.msra.gmra.mxu2 %vm261_vm11, %v936_v24 }
  0xd0   :  { %v233_v60 = vsel %vm232_vm10, %v227_v53, %v229_v59  ;;  %v234_v42 = vsel %vm232_vm10, %v229_v59, %v231_v36 }
  0xd1   :  { %238 = vst [vmem:[#allocation2 + $0x60] sm:$0xf] %v233_v60 }
  0xd2   :  { %239 = vst [vmem:[#allocation2 + $0x68] sm:$0xf] %v234_v42 }
  0xd4   :  { %v395_v40 = vpop.permute.xlu1 %394  ;;  %v471_v61 = vpop.permute.xlu2 %470 }
  0xd5   :  { %v400_v62 = vsel %vm79_vm2, %v395_v40, %v906_v51 }
  0xd6   :  { %405 = vst [vmem:[#allocation2 + $0x18] sm:$0xf] %v400_v62 }
  0xd7   :  { %v371_v0 = vpop.permute.xlu0 %370 }
  0xd8   :  { %v376_v1 = vsel %vm53_vm1, %v371_v0, %v911_v57  ;;  %v253_v2 = vld [vmem:[#allocation2 + $0x60] sm:$0xf] }
  0xd9   :  { %650 = vmatpush.msk.msra.mxu0 %vm265_vm8, %v253_v2  ;;  %v254_v3 = vld [vmem:[#allocation2 + $0x68] sm:$0xf]  ;;  %381 = vst [vmem:[#allocation2] sm:$0xf0] %v376_v1 }
  0xda   :  { %652 = vmatpush.msk.msra.mxu1 %vm265_vm8, %v254_v3 }
  0xdb   :  { %287 = vmatpush.msra.mxu0 %v250_v4 }
  0xdc   :  { %307 = vmatpush.msra.mxu1 %v251_v5  ;;  %v493_v7 = vpop.permute.xlu2 %492  ;;  %v921_v9 = vpop.permute.xlu1 %421 }
  0xdd   :  { %288 = vmatpush.msra.mxu0 %v247_v6 }
  0xde   :  { %308 = vmatpush.msra.mxu1 %v248_v8 }
  0xdf   :  { %289 = vmatpush.msra.mxu0 %v244_v63  ;;  %v420_v11 = vpop.permute.xlu0 %419 }
  0xe0   :  { %309 = vmatpush.msra.mxu1 %v245_v10  ;;  %v425_v12 = vsel %vm105_vm3, %v420_v11, %v921_v9  ;;  %v555_v54 = vld [vmem:[#allocation2] sm:$0xff] }
  0xe1   :  { %430 = vst [vmem:[#allocation2 + $0x18] sm:$0xf0] %v425_v12  ;;  %290 = vmatpush.msra.mxu0 %v869_v14 }
  0xe2   :  { %310 = vmatpush.msra.mxu1 %v242_v52  ;;  %651 = vmatmul.msk.f32.vlgmr.msra.gmra.mxu0 %vm261_vm11, %v936_v24 }
  0xe3   :  { %653 = vmatmul.msk.f32.vlgmr.msra.gmra.mxu1 %vm261_vm11, %v936_v24 }
  0xe4   :  { %v497_v13 = vpop.permute.xlu2 %496 }
  0xe5   :  { %505 = vst.msk [vmem:[#allocation2 + $0x58] sm:$0xf] %vm34_vm0, %v497_v13 }
  0xe7   :  { %v446_v15 = vpop.permute.xlu0 %445 }
  0xe8   :  { %v449_v16 = vsel %vm130_vm5, %v444_v58, %v446_v15 }
  0xe9   :  { %454 = vst [vmem:[#allocation2 + $0x30] sm:$0xf] %v449_v16 }
  0xec   :  { %v469_v17 = vpop.permute.xlu1 %468  ;;  %v520_v18 = vpop.permute.xlu2 %519 }
  0xed   :  { %v474_v19 = vsel %vm156_vm7, %v469_v17, %v471_v61 }
  0xee   :  { %479 = vst [vmem:[#allocation2 + $0x30] sm:$0xf0] %v474_v19 }
  0xf4   :  { %v495_v20 = vpop.permute.xlu0 %494  ;;  %v473_v21 = vpop.permute.xlu2 %472 }
  0xf5   :  { %v498_v22 = vsel %vm181_vm9, %v493_v7, %v495_v20  ;;  %v499_v23 = vsel %vm181_vm9, %v495_v20, %v497_v13  ;;  %v475_v14 = vsel %vm156_vm7, %v471_v61, %v473_v21  ;;  %481 = vst.msk [vmem:[#allocation2 + $0x40] sm:$0xf0] %vm61_vm4, %v473_v21  ;;  %v561_v50 = vld [vmem:[#allocation2 + $0x30] sm:$0xff] }
  0xf6   :  { %503 = vst [vmem:[#allocation2 + $0x48] sm:$0xf] %v498_v22 }
  0xf7   :  { %504 = vst [vmem:[#allocation2 + $0x50] sm:$0xf] %v499_v23 }
  0xf8   :  { %480 = vst [vmem:[#allocation2 + $0x38] sm:$0xf0] %v475_v14 }
  0xfc   :  { %v518_v25 = vpop.permute.xlu1 %517  ;;  %v544_v26 = vpop.permute.xlu2 %543 }
  0xfd   :  { %v523_v27 = vsel %vm207_vm6, %v518_v25, %v520_v18 }
  0xfe   :  { %528 = vst [vmem:[#allocation2 + $0x48] sm:$0xf0] %v523_v27 }
  0xff   :  { %v522_v28 = vpop.permute.xlu0 %521 }
 0x100   :  { %v524_v29 = vsel %vm207_vm6, %v520_v18, %v522_v28  ;;  %530 = vst.msk [vmem:[#allocation2 + $0x58] sm:$0xf0] %vm61_vm4, %v522_v28 }
 0x101   :  { %529 = vst [vmem:[#allocation2 + $0x50] sm:$0xf0] %v524_v29 }
 0x104   :  { %v546_v32 = vpop.permute.xlu2 %545  ;;  %v542_v33 = vpop.permute.xlu1 %541 }
 0x105   :  { %v548_v34 = vsel %vm232_vm10, %v544_v26, %v546_v32  ;;  %554 = vst.msk [vmem:[#allocation2 + $0x70] sm:$0xf] %vm34_vm0, %v546_v32  ;;  %v547_v35 = vsel %vm232_vm10, %v542_v33, %v544_v26  ;;  %v564_v49 = vld [vmem:[#allocation2 + $0x48] sm:$0xff] }
 0x106   :  { %553 = vst [vmem:[#allocation2 + $0x68] sm:$0xf] %v548_v34 }
 0x107   :  { %v399_v36 = vpop.permute.xlu0 %398  ;;  %552 = vst [vmem:[#allocation2 + $0x60] sm:$0xf] %v547_v35  ;;  %v566_v48 = vld [vmem:[#allocation2 + $0x58] sm:$0xff] }
 0x108   :  { %v401_v37 = vsel %vm79_vm2, %v906_v51, %v399_v36  ;;  %407 = vst.msk [vmem:[#allocation2 + $0x28] sm:$0xf] %vm34_vm0, %v399_v36  ;;  %v565_v46 = vld [vmem:[#allocation2 + $0x50] sm:$0xff]  ;;  %v558_v51 = vld [vmem:[#allocation2 + $0x18] sm:$0xff] }
 0x109   :  { %406 = vst [vmem:[#allocation2 + $0x20] sm:$0xf] %v401_v37 }
 0x10c   :  { %v375_v38 = vpop.permute.xlu2 %374  ;;  %v448_v39 = vpop.permute.xlu1 %447  ;;  %v569_v41 = vld [vmem:[#allocation2 + $0x70] sm:$0xf] }
 0x10d   :  { %v377_v43 = vsel %vm53_vm1, %v911_v57, %v375_v38  ;;  %383 = vst.msk [vmem:[#allocation2 + $0x10] sm:$0xf0] %vm61_vm4, %v375_v38  ;;  %v450_v44 = vsel %vm130_vm5, %v446_v15, %v448_v39  ;;  %678 = vmatpush.msk.msrb.mxu1 %vm265_vm8, %v569_v41  ;;  %v568_v45 = vld [vmem:[#allocation2 + $0x68] sm:$0xf] }
 0x10e   :  { %382 = vst [vmem:[#allocation2 + $0x8] sm:$0xf0] %v377_v43  ;;  %v567_v47 = vld [vmem:[#allocation2 + $0x60] sm:$0xf]  ;;  %676 = vmatpush.msk.msrb.mxu0 %vm265_vm8, %v568_v45 }
 0x10f   :  { %455 = vst [vmem:[#allocation2 + $0x38] sm:$0xf] %v450_v44  ;;  %674 = vmatpush.msk.msra.mxu3 %vm265_vm8, %v567_v47  ;;  %631 = vmatpush.msrb.mxu1 %v566_v48 }
 0x110   :  { %456 = vst.msk [vmem:[#allocation2 + $0x40] sm:$0xf] %vm34_vm0, %v448_v39  ;;  %611 = vmatpush.msrb.mxu0 %v565_v46 }
 0x111   :  { %591 = vmatpush.msra.mxu3 %v564_v49 }
 0x113   :  { %592 = vmatpush.msra.mxu3 %v561_v50 }
 0x114   :  { %v424_v52 = vpop.permute.xlu1 %423  ;;  %v557_v58 = vld [vmem:[#allocation2 + $0x10] sm:$0xff] }
 0x115   :  { %593 = vmatpush.msra.mxu3 %v558_v51  ;;  %v426_v53 = vsel %vm105_vm3, %v921_v9, %v424_v52  ;;  %432 = vst.msk [vmem:[#allocation2 + $0x28] sm:$0xf0] %vm61_vm4, %v424_v52  ;;  %v556_v60 = vld [vmem:[#allocation2 + $0x8] sm:$0xff] }
 0x116   :  { %431 = vst [vmem:[#allocation2 + $0x20] sm:$0xf0] %v426_v53  ;;  %v562_v55 = vld [vmem:[#allocation2 + $0x38] sm:$0xff] }
 0x117   :  { %v563_v56 = vld [vmem:[#allocation2 + $0x40] sm:$0xff]  ;;  %594 = vmatpush.msra.mxu3 %v555_v54  ;;  %612 = vmatpush.msrb.mxu0 %v562_v55 }
 0x118   :  { %632 = vmatpush.msrb.mxu1 %v563_v56  ;;  %675 = vmatmul.msk.f32.vlgmr.msra.gmra.mxu3 %vm261_vm11, %v936_v24 }
 0x11c   :  { %v560_v57 = vld [vmem:[#allocation2 + $0x28] sm:$0xff] }
 0x11d   :  { %633 = vmatpush.msrb.mxu1 %v560_v57  ;;  %v559_v59 = vld [vmem:[#allocation2 + $0x20] sm:$0xff] }
 0x11e   :  { %613 = vmatpush.msrb.mxu0 %v559_v59 }
 0x11f   :  { %634 = vmatpush.msrb.mxu1 %v557_v58 }
 0x120   :  { %614 = vmatpush.msrb.mxu0 %v556_v60  ;;  %679 = vmatmul.msk.f32.vlgmr.msrb.gmra.mxu1 %vm261_vm11, %v936_v24 }
 0x121   :  { %677 = vmatmul.msk.f32.vlgmr.msrb.gmra.mxu0 %vm261_vm11, %v936_v24 }
 0x134   :  { %v259_v42 = vpop.permute.xlu0 %258 }
 0x152   :  { %v332_v2 = vpop.f32.mrf.mxu2 }
 0x153   :  { %v333_v3 = vadd.f32 %v332_v2, %v259_v42 }
 0x155   :  { %v337_v4 = vmax.f32 %v333_v3, 0.0 }
 0x157   :  { %341 = vst.msk [vmem:[%s995_s4 + $0x10] sm:$0xff] %vm340_vm12, %v337_v4 }
 0x15f   :  { %v292_v61 = vpop.f32.mrf.mxu0 }
 0x160   :  { %v312_v40 = vpop.f32.mrf.mxu1  ;;  %v293_v63 = vadd.f32 %v292_v61, %v259_v42 }
 0x161   :  { %v313_v62 = vadd.f32 %v312_v40, %v259_v42 }
 0x162   :  { %v335_v1 = vmax.f32 %v293_v63, 0.0 }
 0x163   :  { %v336_v0 = vmax.f32 %v313_v62, 0.0 }
 0x164   :  { %338 = vst [vmem:[%s995_s4] sm:$0xff] %v335_v1 }
 0x165   :  { %339 = vst [vmem:[%s995_s4 + $0x8] sm:$0xff] %v336_v0 }
 0x19b   :  { %v596_v5 = vpop.f32.mrf.mxu3 }
 0x19c   :  { %v597_v6 = vadd.f32 %v596_v5, %v259_v42 }
 0x19d   :  { %v636_v7 = vpop.f32.mrf.mxu1 }
 0x19e   :  { %v639_v8 = vmax.f32 %v597_v6, 0.0  ;;  %v616_v9 = vpop.f32.mrf.mxu0  ;;  %v637_v10 = vadd.f32 %v636_v7, %v259_v42 }
 0x19f   :  { %v617_v11 = vadd.f32 %v616_v9, %v259_v42 }
 0x1a0   :  { %680 = vst [vmem:[%s995_s4 + $0x18] sm:$0xff] %v639_v8  ;;  %v641_v12 = vmax.f32 %v637_v10, 0.0 }
 0x1a1   :  { %v640_v13 = vmax.f32 %v617_v11, 0.0 }
 0x1a2   :  { %682 = vst.msk [vmem:[%s995_s4 + $0x28] sm:$0xff] %vm340_vm12, %v641_v12 }
 0x1a3   :  { %681 = vst [vmem:[%s995_s4 + $0x20] sm:$0xff] %v640_v13 }

</bundles_post_ra>
